<compile_context>
chip_gen: v7x
topology: tpu7x:2x2x1
jax: 0.10.0
libtpu: 0.0.40
codegen_flags: <defaults>
</compile_context>

<pallas_src>
import jax
import jax.numpy as jnp
from jax import lax
from jax.experimental import pallas as pl
from jax.experimental.pallas import tpu as pltpu

ALPHA = 0.5
SCALES = 4
_N_PART = 2 + 2 * SCALES        # mse_num, a11, gnum[SCALES], gden[SCALES]
_OUT_LANES = 128                # lane-dense output row per image


def _shift_toward_zero(x, k, axis):
    """out[..., i, ...] = x[..., i + k, ...] along `axis`; zero-filled past the end."""
    n = x.shape[axis]
    body = lax.slice_in_dim(x, k, n, axis=axis)
    pad_shape = tuple(k if d == axis else s for d, s in enumerate(x.shape))
    pad = jnp.zeros(pad_shape, x.dtype)
    return jnp.concatenate([body, pad], axis=axis)


def _ssi_loss_kernel(pred_ref, targ_ref, out_ref):
    pred = pred_ref[...].astype(jnp.float32)          # (H, W)
    targ = targ_ref[...].astype(jnp.float32)
    h, w = pred.shape

    mask = (targ > 0.0).astype(jnp.float32)
    mp = mask * pred

    # ---- compute_scale_and_shift: per-image 2x2 linear solve -----------------------
    a00 = jnp.sum(mp * pred)
    a01 = jnp.sum(mp)
    a11 = jnp.sum(mask)
    b0 = jnp.sum(mp * targ)
    b1 = jnp.sum(mask * targ)

    det = a00 * a11 - a01 * a01
    valid = det != 0.0
    safe_det = jnp.where(valid, det, 1.0)
    x0 = jnp.where(valid, (a11 * b0 - a01 * b1) / safe_det, 0.0)   # scale
    x1 = jnp.where(valid, (-a01 * b0 + a00 * b1) / safe_det, 0.0)  # shift

    # ---- shared masked residual (reused by MSE term and all gradient scales) -------
    res = x0 * pred + x1 - targ
    diff = mask * res
    mse_num = jnp.sum(diff * res)              # == sum(mask * res * res), mask is 0/1

    row_ids = lax.broadcasted_iota(jnp.int32, (h, w), 0)
    col_ids = lax.broadcasted_iota(jnp.int32, (h, w), 1)
    rc = row_ids | col_ids                     # (row%2^s==0 & col%2^s==0) <=> (rc & (2^s-1))==0

    gnums, gdens = [], []
    for s in range(SCALES):
        step = 1 << s
        if step == 1:
            msel = mask
            gden = a11                         # reuse a11: no extra reduce for scale 0
        else:
            sel = (rc & (step - 1)) == 0
            msel = jnp.where(sel, mask, 0.0)   # subsampled mask embedded at full res
            gden = jnp.sum(msel)
        # neighbours at distance `step` (x = lanes, y = sublanes); zero-padded shifts
        sd_x = _shift_toward_zero(diff, step, axis=1)
        sm_x = _shift_toward_zero(msel, step, axis=1)
        sd_y = _shift_toward_zero(diff, step, axis=0)
        sm_y = _shift_toward_zero(msel, step, axis=0)
        # (|dx|*mx + |dy|*my) * msel  == gx + gy exactly (masks are 0/1)
        g = (jnp.abs(sd_x - diff) * sm_x + jnp.abs(sd_y - diff) * sm_y) * msel
        gnums.append(jnp.sum(g))               # single reduce per scale
        gdens.append(gden)

    # ---- pack the 10 per-image partial sums into the first lanes of one (1,128) row --
    partials = [mse_num, a11] + gnums + gdens
    lane = lax.broadcasted_iota(jnp.int32, (1, _OUT_LANES), 1)
    vec = jnp.zeros((1, _OUT_LANES), jnp.float32)
    for k, v in enumerate(partials):
        vec = jnp.where(lane == k, v, vec)
    out_ref[...] = vec


def scale_and_shift_invariant_loss(prediction, target, *, alpha=ALPHA, scales=SCALES):
    """prediction, target: (B, 1, H, W) or (B, H, W); any float dtype (cast in-kernel)."""
    assert scales == SCALES, "kernel is specialized for the module default scales=4"
    pred = prediction
    targ = target
    if pred.ndim == 4:
        pred = jnp.squeeze(pred, axis=1)       # squeeze ONLY the channel dim (B==1 safe)
    if targ.ndim == 4:
        targ = jnp.squeeze(targ, axis=1)
    B, H, W = pred.shape
    assert H > (1 << (scales - 1)) and W > (1 << (scales - 1)), "image too small for scales"

    bytes_in = B * H * W * (jnp.dtype(pred.dtype).itemsize + jnp.dtype(targ.dtype).itemsize)
    cost = pl.CostEstimate(
        flops=int(100 * B * H * W),
        transcendentals=0,
        bytes_accessed=int(bytes_in + B * _OUT_LANES * 4),
    )

    partial = pl.pallas_call(
        _ssi_loss_kernel,
        out_shape=jax.ShapeDtypeStruct((B, 1, _OUT_LANES), jnp.float32),
        grid=(B,),
        in_specs=[
            pl.BlockSpec((None, H, W), lambda b: (b, 0, 0)),
            pl.BlockSpec((None, H, W), lambda b: (b, 0, 0)),
        ],
        out_specs=pl.BlockSpec((None, 1, _OUT_LANES), lambda b: (b, 0, 0)),
        compiler_params=pltpu.CompilerParams(
            dimension_semantics=("parallel",),        # independent per-image steps (v7x 2-TC)
            vmem_limit_bytes=32 * 1024 * 1024,
        ),
        cost_estimate=cost,
    )(pred, targ)

    # ---- tiny batch-based combine (plain JAX glue on 10 scalars per image) -----------
    p = partial[:, 0, :]                               # (B, 128)
    mse_num = jnp.sum(p[:, 0])
    a11 = jnp.sum(p[:, 1])
    gnum = jnp.sum(p[:, 2:2 + scales], axis=0)         # (scales,)
    gden = jnp.sum(p[:, 2 + scales:2 + 2 * scales], axis=0)

    mse_den = 2.0 * a11
    mse = jnp.where(mse_den != 0.0,
                    mse_num / jnp.where(mse_den != 0.0, mse_den, 1.0), 0.0)
    reg = jnp.sum(jnp.where(gden != 0.0,
                            gnum / jnp.where(gden != 0.0, gden, 1.0), 0.0))
    return mse + alpha * reg


# ---------------- pure-JAX reference (mirrors the torch code) ----------------
def _reference_loss(prediction, target, alpha=ALPHA, scales=SCALES):
    pred = prediction
    targ = target
    if pred.ndim == 4:
        pred = jnp.squeeze(pred, axis=1)
    if targ.ndim == 4:
        targ = jnp.squeeze(targ, axis=1)
    pred = pred.astype(jnp.float32)
    targ = targ.astype(jnp.float32)
    mask = (targ > 0).astype(jnp.float32)

    a00 = jnp.sum(mask * pred * pred, axis=(1, 2))
    a01 = jnp.sum(mask * pred, axis=(1, 2))
    a11 = jnp.sum(mask, axis=(1, 2))
    b0 = jnp.sum(mask * pred * targ, axis=(1, 2))
    b1 = jnp.sum(mask * targ, axis=(1, 2))
    det = a00 * a11 - a01 * a01
    sd = jnp.where(det != 0, det, 1.0)
    x0 = jnp.where(det != 0, (a11 * b0 - a01 * b1) / sd, 0.0)
    x1 = jnp.where(det != 0, (-a01 * b0 + a00 * b1) / sd, 0.0)

    ssi = x0[:, None, None] * pred + x1[:, None, None]

    def mse(p, t, m):
        num = jnp.sum(m * (p - t) ** 2)
        den = 2.0 * jnp.sum(m)
        return jnp.where(den != 0, num / jnp.where(den != 0, den, 1.0), 0.0)

    def grad(p, t, m):
        d = m * (p - t)
        gx = jnp.abs(d[:, :, 1:] - d[:, :, :-1]) * (m[:, :, 1:] * m[:, :, :-1])
        gy = jnp.abs(d[:, 1:, :] - d[:, :-1, :]) * (m[:, 1:, :] * m[:, :-1, :])
        num = jnp.sum(gx) + jnp.sum(gy)
        den = jnp.sum(m)
        return jnp.where(den != 0, num / jnp.where(den != 0, den, 1.0), 0.0)

    total = mse(ssi, targ, mask)
    for s in range(scales):
        step = 2 ** s
        total += alpha * grad(ssi[:, ::step, ::step], targ[:, ::step, ::step],
                              mask[:, ::step, ::step])
    return total


if __name__ == "__main__":
    B, C, H, W = 2, 1, 16, 16
    key = jax.random.PRNGKey(0)
    k1, k2 = jax.random.split(key)
    prediction = jax.random.normal(k1, (B, C, H, W), dtype=jnp.float32)
    # target with a mix of positive (valid) and non-positive (masked-out) values
    target = jax.random.uniform(k2, (B, C, H, W), dtype=jnp.float32,
                                minval=-0.5, maxval=1.5)

    loss_fn = jax.jit(scale_and_shift_invariant_loss)
    loss = loss_fn(prediction, target)
    loss = jax.block_until_ready(loss)

    ref = _reference_loss(prediction, target)
    assert jnp.allclose(loss, ref, rtol=1e-4, atol=1e-5), (loss, ref)

    print("KERNEL_OK")
</pallas_src>

<mosaic_0001>
module attributes {stable_mosaic.version = 11 : i64} {
  func.func @_ssi_loss_kernel(%arg0: i32, %arg1: memref<1x16x16xf32, #tpu.memory_space<vmem>>, %arg2: memref<1x16x16xf32, #tpu.memory_space<vmem>>, %arg3: memref<1x1x128xf32, #tpu.memory_space<vmem>>) attributes {dimension_semantics = [#tpu.dimension_semantics<parallel>], iteration_bounds = array<i64: 2>, scalar_prefetch = 0 : i64, scratch_operands = 0 : i64, tpu.core_type = #tpu.core_type<tc>, window_params = [{transform_indices = @transform_0, window_bounds = array<i64: 1, 16, 16>}, {transform_indices = @transform_1, window_bounds = array<i64: 1, 16, 16>}, {transform_indices = @transform_2, window_bounds = array<i64: 1, 1, 128>}]} {
    %c0 = arith.constant 0 : index
    %c0_0 = arith.constant 0 : index
    %c0_1 = arith.constant 0 : index
    %0 = vector.load %arg1[%c0, %c0_0, %c0_1] : memref<1x16x16xf32, #tpu.memory_space<vmem>>, vector<1x16x16xf32>
    %1 = vector.shape_cast %0 : vector<1x16x16xf32> to vector<16x16xf32>
    %c0_2 = arith.constant 0 : index
    %c0_3 = arith.constant 0 : index
    %c0_4 = arith.constant 0 : index
    %2 = vector.load %arg2[%c0_2, %c0_3, %c0_4] : memref<1x16x16xf32, #tpu.memory_space<vmem>>, vector<1x16x16xf32>
    %3 = vector.shape_cast %2 : vector<1x16x16xf32> to vector<16x16xf32>
    %cst = arith.constant 0.000000e+00 : f32
    %4 = vector.broadcast %cst : f32 to vector<16x16xf32>
    %5 = arith.cmpf ogt, %3, %4 : vector<16x16xf32>
    %6 = arith.extui %5 : vector<16x16xi1> to vector<16x16xi32>
    %7 = arith.sitofp %6 : vector<16x16xi32> to vector<16x16xf32>
    %8 = arith.mulf %7, %1 : vector<16x16xf32>
    %9 = arith.mulf %8, %1 : vector<16x16xf32>
    %10 = vector.shape_cast %9 : vector<16x16xf32> to vector<1x16x16xf32>
    %cst_5 = arith.constant dense<0.000000e+00> : vector<1xf32>
    %11 = vector.multi_reduction <add>, %10, %cst_5 [1, 2] : vector<1x16x16xf32> to vector<1xf32>
    %12 = vector.shape_cast %11 : vector<1xf32> to vector<1x1x1xf32>
    %13 = vector.extract %12[0, 0, 0] : f32 from vector<1x1x1xf32>
    %14 = vector.shape_cast %8 : vector<16x16xf32> to vector<1x16x16xf32>
    %cst_6 = arith.constant dense<0.000000e+00> : vector<1xf32>
    %15 = vector.multi_reduction <add>, %14, %cst_6 [1, 2] : vector<1x16x16xf32> to vector<1xf32>
    %16 = vector.shape_cast %15 : vector<1xf32> to vector<1x1x1xf32>
    %17 = vector.extract %16[0, 0, 0] : f32 from vector<1x1x1xf32>
    %18 = vector.shape_cast %7 : vector<16x16xf32> to vector<1x16x16xf32>
    %cst_7 = arith.constant dense<0.000000e+00> : vector<1xf32>
    %19 = vector.multi_reduction <add>, %18, %cst_7 [1, 2] : vector<1x16x16xf32> to vector<1xf32>
    %20 = vector.shape_cast %19 : vector<1xf32> to vector<1x1x1xf32>
    %21 = vector.extract %20[0, 0, 0] : f32 from vector<1x1x1xf32>
    %22 = arith.mulf %8, %3 : vector<16x16xf32>
    %23 = vector.shape_cast %22 : vector<16x16xf32> to vector<1x16x16xf32>
    %cst_8 = arith.constant dense<0.000000e+00> : vector<1xf32>
    %24 = vector.multi_reduction <add>, %23, %cst_8 [1, 2] : vector<1x16x16xf32> to vector<1xf32>
    %25 = vector.shape_cast %24 : vector<1xf32> to vector<1x1x1xf32>
    %26 = vector.extract %25[0, 0, 0] : f32 from vector<1x1x1xf32>
    %27 = arith.mulf %7, %3 : vector<16x16xf32>
    %28 = vector.shape_cast %27 : vector<16x16xf32> to vector<1x16x16xf32>
    %cst_9 = arith.constant dense<0.000000e+00> : vector<1xf32>
    %29 = vector.multi_reduction <add>, %28, %cst_9 [1, 2] : vector<1x16x16xf32> to vector<1xf32>
    %30 = vector.shape_cast %29 : vector<1xf32> to vector<1x1x1xf32>
    %31 = vector.extract %30[0, 0, 0] : f32 from vector<1x1x1xf32>
    %32 = arith.mulf %13, %21 : f32
    %33 = arith.mulf %17, %17 : f32
    %34 = arith.subf %32, %33 : f32
    %cst_10 = arith.constant 0.000000e+00 : f32
    %35 = arith.cmpf one, %34, %cst_10 : f32
    %cst_11 = arith.constant 1.000000e+00 : f32
    %36 = arith.select %35, %34, %cst_11 : f32
    %37 = arith.mulf %21, %26 : f32
    %38 = arith.mulf %17, %31 : f32
    %39 = arith.subf %37, %38 : f32
    %40 = arith.divf %39, %36 : f32
    %cst_12 = arith.constant 0.000000e+00 : f32
    %41 = arith.select %35, %40, %cst_12 : f32
    %cst_13 = arith.constant 0.000000e+00 : f32
    %42 = arith.subf %cst_13, %17 : f32
    %43 = arith.mulf %42, %26 : f32
    %44 = arith.mulf %13, %31 : f32
    %45 = arith.addf %43, %44 : f32
    %46 = arith.divf %45, %36 : f32
    %cst_14 = arith.constant 0.000000e+00 : f32
    %47 = arith.select %35, %46, %cst_14 : f32
    %48 = vector.broadcast %41 : f32 to vector<16x16xf32>
    %49 = arith.mulf %48, %1 : vector<16x16xf32>
    %50 = vector.broadcast %47 : f32 to vector<16x16xf32>
    %51 = arith.addf %49, %50 : vector<16x16xf32>
    %52 = arith.subf %51, %3 : vector<16x16xf32>
    %53 = arith.mulf %7, %52 : vector<16x16xf32>
    %54 = arith.mulf %53, %52 : vector<16x16xf32>
    %55 = vector.shape_cast %54 : vector<16x16xf32> to vector<1x16x16xf32>
    %cst_15 = arith.constant dense<0.000000e+00> : vector<1xf32>
    %56 = vector.multi_reduction <add>, %55, %cst_15 [1, 2] : vector<1x16x16xf32> to vector<1xf32>
    %57 = vector.shape_cast %56 : vector<1xf32> to vector<1x1x1xf32>
    %58 = vector.extract %57[0, 0, 0] : f32 from vector<1x1x1xf32>
    %59 = tpu.iota {dimensions = array<i32: 0>} : vector<16x16xi32>
    %60 = tpu.iota {dimensions = array<i32: 1>} : vector<16x16xi32>
    %61 = arith.ori %59, %60 : vector<16x16xi32>
    %62 = vector.extract_strided_slice %53 {offsets = [0, 1], sizes = [16, 15], strides = [1, 1]} : vector<16x16xf32> to vector<16x15xf32>
    %cst_16 = arith.constant 0.000000e+00 : f32
    %63 = vector.broadcast %cst_16 : f32 to vector<16x1xf32>
    %64 = tpu.concatenate %62, %63 in 1 : vector<16x15xf32>, vector<16x1xf32> -> vector<16x16xf32>
    %65 = vector.extract_strided_slice %7 {offsets = [0, 1], sizes = [16, 15], strides = [1, 1]} : vector<16x16xf32> to vector<16x15xf32>
    %cst_17 = arith.constant 0.000000e+00 : f32
    %66 = vector.broadcast %cst_17 : f32 to vector<16x1xf32>
    %67 = tpu.concatenate %65, %66 in 1 : vector<16x15xf32>, vector<16x1xf32> -> vector<16x16xf32>
    %68 = vector.extract_strided_slice %53 {offsets = [1, 0], sizes = [15, 16], strides = [1, 1]} : vector<16x16xf32> to vector<15x16xf32>
    %cst_18 = arith.constant 0.000000e+00 : f32
    %69 = vector.broadcast %cst_18 : f32 to vector<1x16xf32>
    %70 = tpu.concatenate %68, %69 in 0 : vector<15x16xf32>, vector<1x16xf32> -> vector<16x16xf32>
    %71 = vector.extract_strided_slice %7 {offsets = [1, 0], sizes = [15, 16], strides = [1, 1]} : vector<16x16xf32> to vector<15x16xf32>
    %cst_19 = arith.constant 0.000000e+00 : f32
    %72 = vector.broadcast %cst_19 : f32 to vector<1x16xf32>
    %73 = tpu.concatenate %71, %72 in 0 : vector<15x16xf32>, vector<1x16xf32> -> vector<16x16xf32>
    %74 = arith.subf %64, %53 : vector<16x16xf32>
    %75 = math.absf %74 : vector<16x16xf32>
    %76 = arith.mulf %75, %67 : vector<16x16xf32>
    %77 = arith.subf %70, %53 : vector<16x16xf32>
    %78 = math.absf %77 : vector<16x16xf32>
    %79 = arith.mulf %78, %73 : vector<16x16xf32>
    %80 = arith.addf %76, %79 : vector<16x16xf32>
    %81 = arith.mulf %80, %7 : vector<16x16xf32>
    %82 = vector.shape_cast %81 : vector<16x16xf32> to vector<1x16x16xf32>
    %cst_20 = arith.constant dense<0.000000e+00> : vector<1xf32>
    %83 = vector.multi_reduction <add>, %82, %cst_20 [1, 2] : vector<1x16x16xf32> to vector<1xf32>
    %84 = vector.shape_cast %83 : vector<1xf32> to vector<1x1x1xf32>
    %85 = vector.extract %84[0, 0, 0] : f32 from vector<1x1x1xf32>
    %c1_i32 = arith.constant 1 : i32
    %86 = vector.broadcast %c1_i32 : i32 to vector<16x16xi32>
    %87 = arith.andi %61, %86 : vector<16x16xi32>
    %c0_i32 = arith.constant 0 : i32
    %88 = vector.broadcast %c0_i32 : i32 to vector<16x16xi32>
    %89 = arith.cmpi eq, %87, %88 : vector<16x16xi32>
    %cst_21 = arith.constant 0.000000e+00 : f32
    %90 = vector.broadcast %cst_21 : f32 to vector<16x16xf32>
    %91 = arith.select %89, %7, %90 : vector<16x16xi1>, vector<16x16xf32>
    %92 = vector.shape_cast %91 : vector<16x16xf32> to vector<1x16x16xf32>
    %cst_22 = arith.constant dense<0.000000e+00> : vector<1xf32>
    %93 = vector.multi_reduction <add>, %92, %cst_22 [1, 2] : vector<1x16x16xf32> to vector<1xf32>
    %94 = vector.shape_cast %93 : vector<1xf32> to vector<1x1x1xf32>
    %95 = vector.extract %94[0, 0, 0] : f32 from vector<1x1x1xf32>
    %96 = vector.extract_strided_slice %53 {offsets = [0, 2], sizes = [16, 14], strides = [1, 1]} : vector<16x16xf32> to vector<16x14xf32>
    %cst_23 = arith.constant 0.000000e+00 : f32
    %97 = vector.broadcast %cst_23 : f32 to vector<16x2xf32>
    %98 = tpu.concatenate %96, %97 in 1 : vector<16x14xf32>, vector<16x2xf32> -> vector<16x16xf32>
    %99 = vector.extract_strided_slice %91 {offsets = [0, 2], sizes = [16, 14], strides = [1, 1]} : vector<16x16xf32> to vector<16x14xf32>
    %cst_24 = arith.constant 0.000000e+00 : f32
    %100 = vector.broadcast %cst_24 : f32 to vector<16x2xf32>
    %101 = tpu.concatenate %99, %100 in 1 : vector<16x14xf32>, vector<16x2xf32> -> vector<16x16xf32>
    %102 = vector.extract_strided_slice %53 {offsets = [2, 0], sizes = [14, 16], strides = [1, 1]} : vector<16x16xf32> to vector<14x16xf32>
    %cst_25 = arith.constant 0.000000e+00 : f32
    %103 = vector.broadcast %cst_25 : f32 to vector<2x16xf32>
    %104 = tpu.concatenate %102, %103 in 0 : vector<14x16xf32>, vector<2x16xf32> -> vector<16x16xf32>
    %105 = vector.extract_strided_slice %91 {offsets = [2, 0], sizes = [14, 16], strides = [1, 1]} : vector<16x16xf32> to vector<14x16xf32>
    %cst_26 = arith.constant 0.000000e+00 : f32
    %106 = vector.broadcast %cst_26 : f32 to vector<2x16xf32>
    %107 = tpu.concatenate %105, %106 in 0 : vector<14x16xf32>, vector<2x16xf32> -> vector<16x16xf32>
    %108 = arith.subf %98, %53 : vector<16x16xf32>
    %109 = math.absf %108 : vector<16x16xf32>
    %110 = arith.mulf %109, %101 : vector<16x16xf32>
    %111 = arith.subf %104, %53 : vector<16x16xf32>
    %112 = math.absf %111 : vector<16x16xf32>
    %113 = arith.mulf %112, %107 : vector<16x16xf32>
    %114 = arith.addf %110, %113 : vector<16x16xf32>
    %115 = arith.mulf %114, %91 : vector<16x16xf32>
    %116 = vector.shape_cast %115 : vector<16x16xf32> to vector<1x16x16xf32>
    %cst_27 = arith.constant dense<0.000000e+00> : vector<1xf32>
    %117 = vector.multi_reduction <add>, %116, %cst_27 [1, 2] : vector<1x16x16xf32> to vector<1xf32>
    %118 = vector.shape_cast %117 : vector<1xf32> to vector<1x1x1xf32>
    %119 = vector.extract %118[0, 0, 0] : f32 from vector<1x1x1xf32>
    %c3_i32 = arith.constant 3 : i32
    %120 = vector.broadcast %c3_i32 : i32 to vector<16x16xi32>
    %121 = arith.andi %61, %120 : vector<16x16xi32>
    %c0_i32_28 = arith.constant 0 : i32
    %122 = vector.broadcast %c0_i32_28 : i32 to vector<16x16xi32>
    %123 = arith.cmpi eq, %121, %122 : vector<16x16xi32>
    %cst_29 = arith.constant 0.000000e+00 : f32
    %124 = vector.broadcast %cst_29 : f32 to vector<16x16xf32>
    %125 = arith.select %123, %7, %124 : vector<16x16xi1>, vector<16x16xf32>
    %126 = vector.shape_cast %125 : vector<16x16xf32> to vector<1x16x16xf32>
    %cst_30 = arith.constant dense<0.000000e+00> : vector<1xf32>
    %127 = vector.multi_reduction <add>, %126, %cst_30 [1, 2] : vector<1x16x16xf32> to vector<1xf32>
    %128 = vector.shape_cast %127 : vector<1xf32> to vector<1x1x1xf32>
    %129 = vector.extract %128[0, 0, 0] : f32 from vector<1x1x1xf32>
    %130 = vector.extract_strided_slice %53 {offsets = [0, 4], sizes = [16, 12], strides = [1, 1]} : vector<16x16xf32> to vector<16x12xf32>
    %cst_31 = arith.constant 0.000000e+00 : f32
    %131 = vector.broadcast %cst_31 : f32 to vector<16x4xf32>
    %132 = tpu.concatenate %130, %131 in 1 : vector<16x12xf32>, vector<16x4xf32> -> vector<16x16xf32>
    %133 = vector.extract_strided_slice %125 {offsets = [0, 4], sizes = [16, 12], strides = [1, 1]} : vector<16x16xf32> to vector<16x12xf32>
    %cst_32 = arith.constant 0.000000e+00 : f32
    %134 = vector.broadcast %cst_32 : f32 to vector<16x4xf32>
    %135 = tpu.concatenate %133, %134 in 1 : vector<16x12xf32>, vector<16x4xf32> -> vector<16x16xf32>
    %136 = vector.extract_strided_slice %53 {offsets = [4, 0], sizes = [12, 16], strides = [1, 1]} : vector<16x16xf32> to vector<12x16xf32>
    %cst_33 = arith.constant 0.000000e+00 : f32
    %137 = vector.broadcast %cst_33 : f32 to vector<4x16xf32>
    %138 = tpu.concatenate %136, %137 in 0 : vector<12x16xf32>, vector<4x16xf32> -> vector<16x16xf32>
    %139 = vector.extract_strided_slice %125 {offsets = [4, 0], sizes = [12, 16], strides = [1, 1]} : vector<16x16xf32> to vector<12x16xf32>
    %cst_34 = arith.constant 0.000000e+00 : f32
    %140 = vector.broadcast %cst_34 : f32 to vector<4x16xf32>
    %141 = tpu.concatenate %139, %140 in 0 : vector<12x16xf32>, vector<4x16xf32> -> vector<16x16xf32>
    %142 = arith.subf %132, %53 : vector<16x16xf32>
    %143 = math.absf %142 : vector<16x16xf32>
    %144 = arith.mulf %143, %135 : vector<16x16xf32>
    %145 = arith.subf %138, %53 : vector<16x16xf32>
    %146 = math.absf %145 : vector<16x16xf32>
    %147 = arith.mulf %146, %141 : vector<16x16xf32>
    %148 = arith.addf %144, %147 : vector<16x16xf32>
    %149 = arith.mulf %148, %125 : vector<16x16xf32>
    %150 = vector.shape_cast %149 : vector<16x16xf32> to vector<1x16x16xf32>
    %cst_35 = arith.constant dense<0.000000e+00> : vector<1xf32>
    %151 = vector.multi_reduction <add>, %150, %cst_35 [1, 2] : vector<1x16x16xf32> to vector<1xf32>
    %152 = vector.shape_cast %151 : vector<1xf32> to vector<1x1x1xf32>
    %153 = vector.extract %152[0, 0, 0] : f32 from vector<1x1x1xf32>
    %c7_i32 = arith.constant 7 : i32
    %154 = vector.broadcast %c7_i32 : i32 to vector<16x16xi32>
    %155 = arith.andi %61, %154 : vector<16x16xi32>
    %c0_i32_36 = arith.constant 0 : i32
    %156 = vector.broadcast %c0_i32_36 : i32 to vector<16x16xi32>
    %157 = arith.cmpi eq, %155, %156 : vector<16x16xi32>
    %cst_37 = arith.constant 0.000000e+00 : f32
    %158 = vector.broadcast %cst_37 : f32 to vector<16x16xf32>
    %159 = arith.select %157, %7, %158 : vector<16x16xi1>, vector<16x16xf32>
    %160 = vector.shape_cast %159 : vector<16x16xf32> to vector<1x16x16xf32>
    %cst_38 = arith.constant dense<0.000000e+00> : vector<1xf32>
    %161 = vector.multi_reduction <add>, %160, %cst_38 [1, 2] : vector<1x16x16xf32> to vector<1xf32>
    %162 = vector.shape_cast %161 : vector<1xf32> to vector<1x1x1xf32>
    %163 = vector.extract %162[0, 0, 0] : f32 from vector<1x1x1xf32>
    %164 = vector.extract_strided_slice %53 {offsets = [0, 8], sizes = [16, 8], strides = [1, 1]} : vector<16x16xf32> to vector<16x8xf32>
    %cst_39 = arith.constant 0.000000e+00 : f32
    %165 = vector.broadcast %cst_39 : f32 to vector<16x8xf32>
    %166 = tpu.concatenate %164, %165 in 1 : vector<16x8xf32>, vector<16x8xf32> -> vector<16x16xf32>
    %167 = vector.extract_strided_slice %159 {offsets = [0, 8], sizes = [16, 8], strides = [1, 1]} : vector<16x16xf32> to vector<16x8xf32>
    %cst_40 = arith.constant 0.000000e+00 : f32
    %168 = vector.broadcast %cst_40 : f32 to vector<16x8xf32>
    %169 = tpu.concatenate %167, %168 in 1 : vector<16x8xf32>, vector<16x8xf32> -> vector<16x16xf32>
    %170 = vector.extract_strided_slice %53 {offsets = [8, 0], sizes = [8, 16], strides = [1, 1]} : vector<16x16xf32> to vector<8x16xf32>
    %cst_41 = arith.constant 0.000000e+00 : f32
    %171 = vector.broadcast %cst_41 : f32 to vector<8x16xf32>
    %172 = tpu.concatenate %170, %171 in 0 : vector<8x16xf32>, vector<8x16xf32> -> vector<16x16xf32>
    %173 = vector.extract_strided_slice %159 {offsets = [8, 0], sizes = [8, 16], strides = [1, 1]} : vector<16x16xf32> to vector<8x16xf32>
    %cst_42 = arith.constant 0.000000e+00 : f32
    %174 = vector.broadcast %cst_42 : f32 to vector<8x16xf32>
    %175 = tpu.concatenate %173, %174 in 0 : vector<8x16xf32>, vector<8x16xf32> -> vector<16x16xf32>
    %176 = arith.subf %166, %53 : vector<16x16xf32>
    %177 = math.absf %176 : vector<16x16xf32>
    %178 = arith.mulf %177, %169 : vector<16x16xf32>
    %179 = arith.subf %172, %53 : vector<16x16xf32>
    %180 = math.absf %179 : vector<16x16xf32>
    %181 = arith.mulf %180, %175 : vector<16x16xf32>
    %182 = arith.addf %178, %181 : vector<16x16xf32>
    %183 = arith.mulf %182, %159 : vector<16x16xf32>
    %184 = vector.shape_cast %183 : vector<16x16xf32> to vector<1x16x16xf32>
    %cst_43 = arith.constant dense<0.000000e+00> : vector<1xf32>
    %185 = vector.multi_reduction <add>, %184, %cst_43 [1, 2] : vector<1x16x16xf32> to vector<1xf32>
    %186 = vector.shape_cast %185 : vector<1xf32> to vector<1x1x1xf32>
    %187 = vector.extract %186[0, 0, 0] : f32 from vector<1x1x1xf32>
    %188 = tpu.iota {dimensions = array<i32: 1>} : vector<1x128xi32>
    %cst_44 = arith.constant 0.000000e+00 : f32
    %189 = vector.broadcast %cst_44 : f32 to vector<1x128xf32>
    %c0_i32_45 = arith.constant 0 : i32
    %190 = vector.broadcast %c0_i32_45 : i32 to vector<1x128xi32>
    %191 = arith.cmpi eq, %188, %190 : vector<1x128xi32>
    %192 = vector.broadcast %58 : f32 to vector<1x128xf32>
    %193 = arith.select %191, %192, %189 : vector<1x128xi1>, vector<1x128xf32>
    %c1_i32_46 = arith.constant 1 : i32
    %194 = vector.broadcast %c1_i32_46 : i32 to vector<1x128xi32>
    %195 = arith.cmpi eq, %188, %194 : vector<1x128xi32>
    %196 = vector.broadcast %21 : f32 to vector<1x128xf32>
    %197 = arith.select %195, %196, %193 : vector<1x128xi1>, vector<1x128xf32>
    %c2_i32 = arith.constant 2 : i32
    %198 = vector.broadcast %c2_i32 : i32 to vector<1x128xi32>
    %199 = arith.cmpi eq, %188, %198 : vector<1x128xi32>
    %200 = vector.broadcast %85 : f32 to vector<1x128xf32>
    %201 = arith.select %199, %200, %197 : vector<1x128xi1>, vector<1x128xf32>
    %c3_i32_47 = arith.constant 3 : i32
    %202 = vector.broadcast %c3_i32_47 : i32 to vector<1x128xi32>
    %203 = arith.cmpi eq, %188, %202 : vector<1x128xi32>
    %204 = vector.broadcast %119 : f32 to vector<1x128xf32>
    %205 = arith.select %203, %204, %201 : vector<1x128xi1>, vector<1x128xf32>
    %c4_i32 = arith.constant 4 : i32
    %206 = vector.broadcast %c4_i32 : i32 to vector<1x128xi32>
    %207 = arith.cmpi eq, %188, %206 : vector<1x128xi32>
    %208 = vector.broadcast %153 : f32 to vector<1x128xf32>
    %209 = arith.select %207, %208, %205 : vector<1x128xi1>, vector<1x128xf32>
    %c5_i32 = arith.constant 5 : i32
    %210 = vector.broadcast %c5_i32 : i32 to vector<1x128xi32>
    %211 = arith.cmpi eq, %188, %210 : vector<1x128xi32>
    %212 = vector.broadcast %187 : f32 to vector<1x128xf32>
    %213 = arith.select %211, %212, %209 : vector<1x128xi1>, vector<1x128xf32>
    %c6_i32 = arith.constant 6 : i32
    %214 = vector.broadcast %c6_i32 : i32 to vector<1x128xi32>
    %215 = arith.cmpi eq, %188, %214 : vector<1x128xi32>
    %216 = vector.broadcast %21 : f32 to vector<1x128xf32>
    %217 = arith.select %215, %216, %213 : vector<1x128xi1>, vector<1x128xf32>
    %c7_i32_48 = arith.constant 7 : i32
    %218 = vector.broadcast %c7_i32_48 : i32 to vector<1x128xi32>
    %219 = arith.cmpi eq, %188, %218 : vector<1x128xi32>
    %220 = vector.broadcast %95 : f32 to vector<1x128xf32>
    %221 = arith.select %219, %220, %217 : vector<1x128xi1>, vector<1x128xf32>
    %c8_i32 = arith.constant 8 : i32
    %222 = vector.broadcast %c8_i32 : i32 to vector<1x128xi32>
    %223 = arith.cmpi eq, %188, %222 : vector<1x128xi32>
    %224 = vector.broadcast %129 : f32 to vector<1x128xf32>
    %225 = arith.select %223, %224, %221 : vector<1x128xi1>, vector<1x128xf32>
    %c9_i32 = arith.constant 9 : i32
    %226 = vector.broadcast %c9_i32 : i32 to vector<1x128xi32>
    %227 = arith.cmpi eq, %188, %226 : vector<1x128xi32>
    %228 = vector.broadcast %163 : f32 to vector<1x128xf32>
    %229 = arith.select %227, %228, %225 : vector<1x128xi1>, vector<1x128xf32>
    %c0_49 = arith.constant 0 : index
    %c0_50 = arith.constant 0 : index
    %c0_51 = arith.constant 0 : index
    %230 = vector.load %arg3[%c0_49, %c0_50, %c0_51] : memref<1x1x128xf32, #tpu.memory_space<vmem>>, vector<1x1x128xf32>
    %231 = vector.shape_cast %230 : vector<1x1x128xf32> to vector<1x128xf32>
    %232 = vector.shape_cast %229 : vector<1x128xf32> to vector<1x1x128xf32>
    tpu.vector_store %arg3[%c0_49, %c0_50, %c0_51], %232 {strides = array<i32>} : memref<1x1x128xf32, #tpu.memory_space<vmem>>, vector<1x1x128xf32>,
    return
  }
  func.func @transform_0(%arg0: i32) -> (i32, i32, i32) {
    %c0_i32 = arith.constant 0 : i32
    %c0_i32_0 = arith.constant 0 : i32
    %c0_i32_1 = arith.constant 0 : i32
    return %arg0, %c0_i32, %c0_i32_0 : i32, i32, i32
  }
  func.func @transform_1(%arg0: i32) -> (i32, i32, i32) {
    %c0_i32 = arith.constant 0 : i32
    %c0_i32_0 = arith.constant 0 : i32
    %c0_i32_1 = arith.constant 0 : i32
    return %arg0, %c0_i32, %c0_i32_0 : i32, i32, i32
  }
  func.func @transform_2(%arg0: i32) -> (i32, i32, i32) {
    %c0_i32 = arith.constant 0 : i32
    %c0_i32_0 = arith.constant 0 : i32
    %c0_i32_1 = arith.constant 0 : i32
    return %arg0, %c0_i32, %c0_i32_0 : i32, i32, i32
  }
}

</mosaic_0001>

<bundles_post_ra>
// kernel: scale_and_shift_invariant_loss.1
= control target key start
LH: loop header
LB: loop body
LE: loop exit
PB: predicated region body
PF: predicated region fallthrough
CT: control target
= control target key end

     0   :  { %7 = vsyncpa [#allocation3], 0  ;;  %s1353_s0 = inlined_call_operand.hbm [shape: f32[2,16,16], index: 0, kind: input, shape index: {}]   ;;  %s1354_s1 = inlined_call_operand.hbm [shape: f32[2,16,16], index: 1, kind: input, shape index: {}]   ;;  %s1355_s2 = inlined_call_operand.vmem [shape: f32[2,1,128], index: 2, kind: output, shape index: {}]  }
   0x1   :  { %9 = vsyncpa [#allocation3 + $0x1], 0 }
   0x2   :  { %10 = vsyncpa [#allocation5], 0 }
   0x3   :  { %12 = vsyncpa [#allocation5 + $0x1], 0  ;;  %s970_s9 = smov 0   ;;  %s972_s10 = smov 0  }
   0x4   :  { %s974_s11 = smov 0   ;;  %s976_s12 = smov 0  }
   0x5 LB: > { %s989_s13 = sadd.s32 4294967295, %s944_s12   ;;  %s992_s14 = sadd.s32 1, %s944_s12   ;;  %s944_s12 = sphi %s976_s12, %s1365_s12   ;;  %s940_s11 = sphi %s974_s11, %s1364_s11   ;;  %s936_s10 = sphi %s972_s10, %s1363_s10   ;;  %s932_s9 = sphi %s970_s9, %s1362_s9  }
   0x6   : > { %s22_s15 = ssub.s32 %s944_s12, %s992_s14  ;;  %s25_s16 = sadd.s32 1, %s940_s11 }
   0x7   : > { %p23_p0 = scmp.eq.s32.totalorder %s22_s15, 0  ;;  %p32_p1 = scmp.ne.s32.totalorder %s940_s11, %s936_s10 }
   0x8   : > { %p33_p2 = scmp.eq.s32.totalorder %s944_s12, 0  ;;  %p38_p3 = scmp.ne.s32.totalorder %s936_s10, %s932_s9 }
   0x9   : > { %s1002_s17 = scalar_select %p23_p0, %s940_s11, %s25_s16  }
   0xa   : > { %p34_p4 = por %p33_p2, %p32_p1  ;;  %p39_p5 = scmp.eq.s32.totalorder %s989_s13, 0 }
   0xb   : > { %p784_p6 = scmp.lt.s32.totalorder %s944_s12, 2  ;;  %s1011_s19 = sand.u32 1, %s940_s11  }
   0xc   : > { %p1006_p7 = por %p39_p5, %p38_p3  ;;  %s730_s20 = sshll.u32 %s1011_s19, 4 }
   0xd   : > { %s743_s21 = sshll.u32 %s944_s12, 8  ;;  %s118_s25 = scalar_lea.vmem [#allocation2], %s730_s20 }
   0xe   : > { %s1357_s18 = scalar_select %p1006_p7, 1, 0 }
   0xf   : > { %s1020_s24 = scalar_lea.hbm %s1353_s0, %s743_s21  ;;  %s125_s26 = sshll.u32 %s118_s25, 4  ;;  %s1024_s26 = int_to_ptr.vmem [resolvable:$true] %s125_s26 }
  0x10   : > { %p1026_p8 = pnand %p784_p6, %p34_p4  ;;  %s115_s28 = scalar_lea.sflag [#allocation3], %s1011_s19 }
  0x11   : > { %s846_s29 = scalar_lea.hbm %s1020_s24, 256  ;;  %s851_s4 = scalar_lea.hbm %s1353_s0, 512 }
  0x12   : > { %p847_p10 = scmp.ne.s32.totalorder %s1020_s24, %s846_s29  ;;  %p848_p11 = pneg %p1026_p8 }
  0x13   : > { %p852_p0 = scmp.lt.u32.totalorder %s1020_s24, %s1353_s0  ;;  %p853_p1 = scmp.lt.u32.totalorder %s851_s4, %s846_s29 }
  0x14   : > { %p849_p12 = pnand %p848_p11, %p847_p10  ;;  %p855_p3 = scmp.lt.u32.totalorder %s846_s29, %s1020_s24 }
  0x15   : > { %p854_p2 = por %p853_p1, %p852_p0 }
  0x16   : > { %p850_p13 = pneg %p849_p12 }
  0x17   : > { %p856_p4 = por %p855_p3, %p854_p2 }
  0x19   : > { %p857_p5 = pnand %p856_p4, %p850_p13 }
  0x1b   : > { %860 = shalt.err (!%p857_p5)
}
  0x1c   : > { %s861_s7 = scalar_lea.vmem %s1024_s26, 256  ;;  %s946_s8 = smov [#allocation2]  }
  0x1d   : > { %p862_p6 = scmp.ne.s32.totalorder %s1024_s26, %s861_s7  ;;  %s866_s9 = sshll.u32 %s946_s8, 4  ;;  %s867_s9 = int_to_ptr.vmem [resolvable:$false] %s866_s9 }
  0x1e   : > { %s868_s15 = scalar_lea.vmem %s867_s9, 512  ;;  %p869_p9 = scmp.lt.s32.totalorder %s1024_s26, %s867_s9 }
  0x1f   : > { %p864_p10 = pnand %p862_p6, %p848_p11  ;;  %p870_p0 = scmp.lt.s32.totalorder %s868_s15, %s861_s7 }
  0x21   : > { %p865_p12 = pneg %p864_p10  ;;  %p871_p1 = por %p870_p0, %p869_p9 }
  0x23   : > { %p872_p2 = pnand %p871_p1, %p865_p12 }
  0x25   : > { %875 = shalt.err (!%p872_p2)
}
  0x26   : > { %s947_s16 = smov 128   ;;  %s948_s22 = smov 8  }
  0x27   : > { %780 = dma.hbm_to_vmem [thread:$0]  (!%p1026_p8), %s1020_s24, 256, %s1024_s26, %s115_s28, %s947_s16, %s947_s16, %s948_s22  }
  0x28   : > { %p154_p9 = scmp.lt.s32.totalorder %s944_s12, 3  ;;  %s1068_s29 = scalar_lea.hbm %s1354_s1, %s743_s21 }
  0x29   : > { %p1359_p13 = scmp.ge.s32.totalorder %s944_s12, 1  ;;  %s139_s3 = scalar_lea.vmem [#allocation4], %s730_s20 }
  0x2a   : > { %s146_s4 = sshll.u32 %s139_s3, 4  ;;  %s136_s24 = scalar_lea.sflag [#allocation5], %s1011_s19  ;;  %s1078_s4 = int_to_ptr.vmem [resolvable:$true] %s146_s4 }
  0x2b   : > { %p1072_p3 = pnand %p1359_p13, %p154_p9  ;;  %s876_s26 = scalar_lea.hbm %s1068_s29, 256 }
  0x2c   : > { %p877_p4 = scmp.ne.s32.totalorder %s1068_s29, %s876_s26  ;;  %s881_s28 = scalar_lea.hbm %s1354_s1, 512 }
  0x2d   : > { %p882_p10 = scmp.lt.u32.totalorder %s1068_s29, %s1354_s1  ;;  %p883_p12 = scmp.lt.u32.totalorder %s881_s28, %s876_s26 }
  0x2e   : > { %p879_p5 = pnand %p877_p4, %p848_p11  ;;  %p885_p1 = scmp.lt.u32.totalorder %s876_s26, %s1068_s29 }
  0x2f   : > { %p884_p0 = por %p883_p12, %p882_p10 }
  0x30   : > { %p880_p6 = pneg %p879_p5 }
  0x31   : > { %p886_p2 = por %p885_p1, %p884_p0 }
  0x33   : > { %p887_p9 = pnand %p886_p2, %p880_p6 }
  0x35   : > { %890 = shalt.err (!%p887_p9)
}
  0x36   : > { %s891_s20 = scalar_lea.vmem %s1078_s4, 256  ;;  %s949_s7 = smov [#allocation4]  }
  0x37   : > { %p892_p13 = scmp.ne.s32.totalorder %s1078_s4, %s891_s20  ;;  %s896_s8 = sshll.u32 %s949_s7, 4  ;;  %s897_s8 = int_to_ptr.vmem [resolvable:$false] %s896_s8 }
  0x38   : > { %s898_s9 = scalar_lea.vmem %s897_s8, 512  ;;  %p899_p7 = scmp.lt.s32.totalorder %s1078_s4, %s897_s8 }
  0x39   : > { %p894_p4 = pnand %p892_p13, %p848_p11  ;;  %p900_p10 = scmp.lt.s32.totalorder %s898_s9, %s891_s20 }
  0x3b   : > { %p895_p5 = pneg %p894_p4  ;;  %p901_p12 = por %p900_p10, %p899_p7 }
  0x3d   : > { %p902_p0 = pnand %p901_p12, %p895_p5 }
  0x3f   : > { %905 = shalt.err (!%p902_p0)
}
  0x40   : > { %783 = dma.hbm_to_vmem [thread:$0]  (!%p1026_p8), %s1068_s29, 256, %s1078_s4, %s136_s24, %s947_s16, %s947_s16, %s948_s22  }
  0x41   : > { %158 = sbr.rel (%p1072_p3) target bundleno = 738 (0x2e2), region = 28  ;;  %s160_s15 = sand.u32 (!%p1072_p3), 1, %s936_s10  }
  0x42   : > { %s737_s23 = sshll.u32 (!%p1072_p3), %s160_s15, 4  ;;  %s161_s25 = scalar_lea.sflag (!%p1072_p3), [#allocation3], %s160_s15 }
  0x43   : > { %s164_s3 = scalar_lea.vmem (!%p1072_p3), [#allocation2], %s737_s23  ;;  %p1361_p7 = scmp.ne.s32.totalorder (!%p1072_p3), %s1357_s18, 0 }
  0x48   : > { %923 = dma.done.wait (%p1361_p7), %s161_s25, 256  }
  0x49   : > { %925 = vsyncadd (%p1361_p7), %s161_s25, 4294967040  ;;  %s170_s27 = scalar_lea.sflag [#allocation5], %s160_s15  ;;  %s173_s19 = scalar_lea.vmem [#allocation4], %s737_s23 }
  0x4a   : > { %927 = dma.done.wait (%p1361_p7), %s170_s27, 256  }
  0x4b   : > { %929 = vsyncadd (%p1361_p7), %s170_s27, 4294967040  ;;  %v1120_v0 = vld [vmem:[%s173_s19] sm:$0xff]  ;;  %v1122_v1 = vld [vmem:[%s173_s19 + $0x8] sm:$0xff]  ;;  %vm214_vm0 = vcmask 130048   ;;  %v950_v4 = vmov 0.0   ;;  %v325_v49 = vlaneseq  ;;  %s951_s18 = smov 127  }
  0x4c   : > { %v1124_v2 = vld [vmem:[%s164_s3] sm:$0xff]  ;;  %vm204_vm1 = vcmp.gt.f32.partialorder %v1120_v0, 0.0  ;;  %vm205_vm2 = vcmp.gt.f32.partialorder %v1122_v1, 0.0  ;;  %v1128_v3 = vld [vmem:[%s164_s3 + $0x8] sm:$0xff]  ;;  %s952_s16 = smov 126   ;;  %s953_s27 = smov 124  }
  0x4d   : > { %v1130_v5 = vsel %vm204_vm1, 1.0, %v950_v4  ;;  %v1132_v6 = vsel %vm205_vm2, 1.0, %v950_v4  ;;  %v326_v53 = vshrl.u32 %v325_v49, 7  ;;  %v1158_v60 = vand.u32 127, %v325_v49  ;;  %s954_s19 = smov 120   ;;  %p197_p11 = scmp.lt.s32.totalorder %s989_s13, 1 }
  0x4e   : > { %v239_v7 = vsel %vm214_vm0, %v1130_v5, 0.0  ;;  %v240_v8 = vsel %vm214_vm0, %v1132_v6, 0.0  ;;  %v210_v9 = vmul.f32 %v1130_v5, %v1124_v2  ;;  %v211_v10 = vmul.f32 %v1132_v6, %v1128_v3 }
  0x4f   : > { %v241_v11 = vadd.f32 %v240_v8, %v239_v7  ;;  %v265_v18 = vmul.f32 %v1130_v5, %v1120_v0  ;;  %v266_v19 = vmul.f32 %v1132_v6, %v1122_v1  ;;  %v327_v59 = vadd.s32 8, %v326_v53  ;;  %s1371_s13 = smov (!%p197_p11, %s989_s13), 1 }
  0x50   : > { %v212_v12 = vmul.f32 %v210_v9, %v1124_v2  ;;  %v213_v13 = vmul.f32 %v211_v10, %v1128_v3  ;;  %v251_v14 = vmul.f32 %v210_v9, %v1120_v0  ;;  %v252_v15 = vmul.f32 %v211_v10, %v1122_v1 }
  0x51   : > { %242 = vadd.xlane.f32.xlu1 %v241_v11  ;;  %v227_v16 = vsel %vm214_vm0, %v210_v9, 0.0  ;;  %v228_v17 = vsel %vm214_vm0, %v211_v10, 0.0  ;;  %v267_v27 = vsel %vm214_vm0, %v265_v18, 0.0  ;;  %v268_v28 = vsel %vm214_vm0, %v266_v19, 0.0 }
  0x52   : > { %v215_v20 = vsel %vm214_vm0, %v212_v12, 0.0  ;;  %v216_v21 = vsel %vm214_vm0, %v213_v13, 0.0  ;;  %v253_v22 = vsel %vm214_vm0, %v251_v14, 0.0  ;;  %v254_v23 = vsel %vm214_vm0, %v252_v15, 0.0 }
  0x53   : > { %v217_v24 = vadd.f32 %v216_v21, %v215_v20  ;;  %v255_v25 = vadd.f32 %v254_v23, %v253_v22  ;;  %v229_v26 = vadd.f32 %v228_v17, %v227_v16  ;;  %v269_v29 = vadd.f32 %v268_v28, %v267_v27 }
  0x54   : > { %v1161_v63 = vor.u32 %v1158_v60, %v326_v53  ;;  %v1164_v4 = vor.u32 %v1158_v60, %v327_v59  ;;  %v824_v15 = vpack.i.bf16 %v1132_v6, %v1130_v5  ;;  %vm353_vm9 = vcmask 1046528  }
  0x55   : > { %218 = vadd.xlane.f32.xlu0 %v217_v24  ;;  %256 = vadd.xlane.f32.xlu1 %v255_v25  ;;  %vm431_vm10 = vcmask 1045504   ;;  %v360_v59 = vrot.slane %v1130_v5, 1  ;;  %vm509_vm11 = vcmask 1043456   ;;  %vm340_vm12 = vcmask 121856  }
  0x56   : > { %v394_v11 = vand.u32 1, %v1161_v63  ;;  %v395_v12 = vand.u32 1, %v1164_v4  ;;  %vm418_vm13 = vcmask 113664   ;;  %vm574_vm14 = vcmask 64512  }
  0x57   : > { %vm496_vm15 = vcmask 97280   ;;  %vm618_vm1 = vcmp.eq.s32.totalorder %v1158_v60, 1  ;;  %vm621_vm2 = vcmp.eq.s32.totalorder %v1158_v60, 2 }
  0x58   : > { %vm396_vm3 = vcmp.eq.s32.totalorder %v394_v11, 0  ;;  %vm397_vm4 = vcmp.eq.s32.totalorder %v395_v12, 0 }
  0x59   : > { %230 = vadd.xlane.f32.xlu0 %v229_v26  ;;  %v1171_v16 = vsel %vm396_vm3, %v1130_v5, 0.0  ;;  %v1174_v17 = vsel %vm397_vm4, %v1132_v6, 0.0  ;;  %vm624_vm3 = vcmp.eq.s32.totalorder %v1158_v60, 3  ;;  %vm627_vm4 = vcmp.eq.s32.totalorder %v1158_v60, 4 }
  0x5a   : > { %v829_v18 = vpack.i.bf16 %v1174_v17, %v1171_v16 }
  0x5d   : > { %270 = vadd.xlane.f32.xlu0 %v269_v29 }
  0x66   : > { %825 = vrot.lane.b32.xlu1 %v824_v15, %s951_s18 }
  0x73   : > { %830 = vrot.lane.b32.xlu0 %v829_v18, %s952_s16 }
  0xde   : > { %v243_v30 = vpop.xlane.xlu1 %242 }
  0xdf   : > { %v244_v31 = vrot.slane %v243_v30, 4 }
  0xe1   : > { %v245_v32 = vadd.f32 %v244_v31, %v243_v30  ;;  %v550_v31 = vand.u32 7, %v1161_v63 }
  0xe2   : > { %v219_v33 = vpop.xlane.xlu0 %218  ;;  %v257_v34 = vpop.xlane.xlu1 %256 }
  0xe3   : > { %v220_v35 = vrot.slane %v219_v33, 4  ;;  %v258_v36 = vrot.slane %v257_v34, 4  ;;  %v246_v39 = vrot.slane %v245_v32, 2  ;;  %vm552_vm5 = vcmp.eq.s32.totalorder %v550_v31, 0 }
  0xe5   : > { %v221_v37 = vadd.f32 %v220_v35, %v219_v33  ;;  %v259_v38 = vadd.f32 %v258_v36, %v257_v34  ;;  %v247_v48 = vadd.f32 %v246_v39, %v245_v32  ;;  %v1211_v34 = vsel %vm552_vm5, %v1130_v5, 0.0 }
  0xe6   : > { %v231_v40 = vpop.xlane.xlu0 %230  ;;  %v826_v53 = vpop.permute.xlu1 %825  ;;  %vm630_vm5 = vcmp.eq.s32.totalorder %v1158_v60, 5 }
  0xe7   : > { %v222_v41 = vrot.slane %v221_v37, 2  ;;  %v260_v42 = vrot.slane %v259_v38, 2  ;;  %v232_v43 = vrot.slane %v231_v40, 4  ;;  %v248_v58 = vrot.slane %v247_v48, 1 }
  0xe9   : > { %v233_v44 = vadd.f32 %v232_v43, %v231_v40  ;;  %v223_v45 = vadd.f32 %v222_v41, %v221_v37  ;;  %v261_v46 = vadd.f32 %v260_v42, %v259_v38  ;;  %v249_v10 = vadd.f32 %v248_v58, %v247_v48 }
  0xea   : > { %v271_v47 = vpop.xlane.xlu0 %270  ;;  %v472_v37 = vand.u32 3, %v1161_v63  ;;  %v473_v38 = vand.u32 3, %v1164_v4  ;;  %v400_v42 = vsel %vm214_vm0, %v1171_v16, 0.0  ;;  %v401_v43 = vsel %vm214_vm0, %v1174_v17, 0.0 }
  0xeb   : > { %v234_v50 = vrot.slane %v233_v44, 2  ;;  %v272_v51 = vrot.slane %v271_v47, 4  ;;  %v224_v52 = vrot.slane %v223_v45, 1  ;;  %v262_v57 = vrot.slane %v261_v46, 1 }
  0xec   : > { %vm474_vm7 = vcmp.eq.s32.totalorder %v472_v37, 0  ;;  %vm475_vm8 = vcmp.eq.s32.totalorder %v473_v38, 0  ;;  %v556_v48 = vsel %vm214_vm0, %v1211_v34, 0.0  ;;  %v439_v63 = vrot.slane %v1174_v17, 2 }
  0xed   : > { %v273_v54 = vadd.f32 %v272_v51, %v271_v47  ;;  %v225_v55 = vadd.f32 %v224_v52, %v223_v45  ;;  %v235_v56 = vadd.f32 %v234_v50, %v233_v44  ;;  %v263_v8 = vadd.f32 %v262_v57, %v261_v46 }
  0xee   : > { %v1225_v39 = vsel %vm474_vm7, %v1130_v5, 0.0  ;;  %v1228_v40 = vsel %vm475_vm8, %v1132_v6, 0.0  ;;  %v402_v44 = vadd.f32 %v401_v43, %v400_v42  ;;  %vm635_vm7 = vcmp.eq.s32.totalorder %v1158_v60, 7 }
  0xef   : > { %v274_v61 = vrot.slane %v273_v54, 2  ;;  %745 = vpush %v225_v55  ;;  %v236_v62 = vrot.slane %v235_v56, 1  ;;  %v834_v41 = vpack.i.bf16 %v1228_v40, %v1225_v39  ;;  %v478_v45 = vsel %vm214_vm0, %v1225_v39, 0.0 }
  0xf0   : > { %v479_v46 = vsel %vm214_vm0, %v1228_v40, 0.0  ;;  %v516_v11 = vrot.slane %v1225_v39, 4  ;;  %vm638_vm8 = vcmp.eq.s32.totalorder %v1158_v60, 8 }
  0xf1   : > { %v237_v7 = vadd.f32 %v236_v62, %v235_v56  ;;  %v275_v9 = vadd.f32 %v274_v61, %v273_v54  ;;  %v480_v47 = vadd.f32 %v479_v46, %v478_v45  ;;  %v1247_v54 = vpop.permute.xlu0 %830  ;;  %v361_v61 = vrot.slane %v1132_v6, 1 }
  0xf2   : > { %v833_v45 = vunpack.i.h.bf16 %v1247_v54 }
  0xf3   : > { %747 = vpush %v237_v7  ;;  %v276_v13 = vrot.slane %v275_v9, 1  ;;  %v362_v12 = vsel %vm353_vm9, %v360_v59, %v361_v61 }
  0xf4   : > { %749 = vpush %v249_v10  ;;  %v827_v10 = vunpack.i.l.bf16 %v826_v53 }
  0xf5   : > { %751 = vpush %v263_v8  ;;  %v277_v14 = vadd.f32 %v276_v13, %v275_v9  ;;  %v438_v8 = vrot.slane %v1171_v16, 2  ;;  %v828_v9 = vunpack.i.h.bf16 %v826_v53 }
  0xf7   : > { %753 = vpush %v277_v14 }
 0x120   : > { %s746_s22 = spop %745 }
 0x124   : > { %s748_s29 = spop %747 }
 0x125   : > { %s280_s30 = smul.f32 %s748_s29, %s748_s29  ;;  %s1180_s4 = spop %749 }
 0x126   : > { %s279_s24 = smul.f32 %s1180_s4, %s746_s22  ;;  %s752_s26 = spop %751 }
 0x127   : > { %s292_s12 = ssub.f32 0.0, %s748_s29  ;;  %s284_s5 = smul.f32 %s752_s26, %s1180_s4 }
 0x128   : > { %s754_s21 = spop %753  ;;  %s281_s28 = ssub.f32 %s279_s24, %s280_s30 }
 0x129   : > { %s285_s6 = smul.f32 %s754_s21, %s748_s29 }
 0x12a   : > { %p282_p8 = scmp.ne.f32.partialorder %s281_s28, 0.0  ;;  %s294_s20 = smul.f32 %s754_s21, %s746_s22 }
 0x12b   : > { %s293_s7 = smul.f32 %s752_s26, %s292_s12  ;;  %s286_s8 = ssub.f32 %s284_s5, %s285_s6 }
 0x12c   : > { %s283_s9 = scalar_select %p282_p8, %s281_s28, 1.0 }
 0x12d   : > { %s295_s15 = sadd.f32 %s294_s20, %s293_s7  ;;  %s199_s28 = scalar_lea.vmem %s1355_s2, %s1371_s13 }
 0x12e   : > { %v287_v19 = vstv %s283_s9 }
 0x12f   : > { %844 = vrcp.f32 %v287_v19 }
 0x139   : > { %v845_v20 = vpop.eup %844 }
 0x13a   : > { %755 = vpush %v845_v20 }
 0x16b   : > { %s756_s23 = spop %755 }
 0x16c   : > { %s290_s25 = smul.f32 %s756_s23, %s286_s8 }
 0x16d   : > { %s299_s3 = smul.f32 %s756_s23, %s295_s15 }
 0x16e   : > { %s1367_s25 = smov (!%p282_p8, %s290_s25), 0.0 }
 0x16f   : > { %s1369_s3 = smov (!%p282_p8, %s299_s3), 0.0  ;;  %v301_v21 = vstv %s1367_s25 }
 0x170   : > { %v302_v22 = vmul.f32 %v301_v21, %v1124_v2  ;;  %v303_v23 = vmul.f32 %v301_v21, %v1128_v3  ;;  %v304_v24 = vstv %s1369_s3  ;;  %v551_v2 = vand.u32 7, %v1164_v4 }
 0x172   : > { %v305_v25 = vadd.f32 %v304_v24, %v302_v22  ;;  %v306_v26 = vadd.f32 %v304_v24, %v303_v23  ;;  %vm553_vm6 = vcmp.eq.s32.totalorder %v551_v2, 0 }
 0x173   : > { %v1214_v35 = vsel %vm553_vm6, %v1132_v6, 0.0  ;;  %vm633_vm6 = vcmp.eq.s32.totalorder %v1158_v60, 6 }
 0x174   : > { %v307_v27 = vsub.f32 %v305_v25, %v1120_v0  ;;  %v308_v28 = vsub.f32 %v306_v26, %v1122_v1  ;;  %v839_v36 = vpack.i.bf16 %v1214_v35, %v1211_v34  ;;  %v557_v49 = vsel %vm214_vm0, %v1214_v35, 0.0 }
 0x175   : > { %v558_v50 = vadd.f32 %v557_v49, %v556_v48  ;;  %v352_v25 = vsel %vm340_vm12, %v828_v9, 0.0  ;;  %v351_v26 = vsel %vm340_vm12, %v827_v10, 0.0  ;;  %v443_v48 = vsel %vm431_vm10, %v439_v63, 0.0 }
 0x176   : > { %v1192_v29 = vmul.f32 %v1130_v5, %v307_v27  ;;  %v1195_v30 = vmul.f32 %v1132_v6, %v308_v28 }
 0x178   : > { %336 = vrot.lane.b32.xlu0 %v1195_v30, %s951_s18  ;;  %334 = vrot.lane.b32.xlu1 %v1192_v29, %s951_s18  ;;  %v311_v0 = vmul.f32 %v1192_v29, %v307_v27  ;;  %v312_v1 = vmul.f32 %v1195_v30, %v308_v28  ;;  %v355_v51 = vrot.slane %v1195_v30, 1  ;;  %v354_v52 = vrot.slane %v1192_v29, 1 }
 0x179   : > { %v433_v56 = vrot.slane %v1195_v30, 2  ;;  %v432_v57 = vrot.slane %v1192_v29, 2  ;;  %v832_v27 = vunpack.i.l.bf16 %v1247_v54  ;;  %v365_v28 = vsel %vm353_vm9, %v361_v61, 0.0 }
 0x17a   : > { %v313_v3 = vsel %vm214_vm0, %v311_v0, 0.0  ;;  %v314_v32 = vsel %vm214_vm0, %v312_v1, 0.0  ;;  %v356_v55 = vsel %vm353_vm9, %v354_v52, %v355_v51  ;;  %v359_v58 = vsel %vm353_vm9, %v355_v51, 0.0 }
 0x17b   : > { %v315_v33 = vadd.f32 %v314_v32, %v313_v3  ;;  %v372_v62 = vsub.f32 %v356_v55, %v1192_v29  ;;  %v373_v4 = vsub.f32 %v359_v58, %v1195_v30  ;;  %v434_v7 = vsel %vm431_vm10, %v432_v57, %v433_v56 }
 0x17c   : > { %492 = vrot.lane.b32.xlu0 %v1195_v30, %s953_s27  ;;  %412 = vrot.lane.b32.xlu1 %v1192_v29, %s952_s16  ;;  %v450_v20 = vsub.f32 %v434_v7, %v1192_v29  ;;  %v437_v24 = vsel %vm431_vm10, %v433_v56, 0.0  ;;  %v510_v3 = vrot.slane %v1192_v29, 4  ;;  %v511_v32 = vrot.slane %v1195_v30, 4 }
 0x17d   : > { %v374_v18 = vand.u32 2147483647, %v372_v62  ;;  %v375_v22 = vand.u32 2147483647, %v373_v4  ;;  %v451_v38 = vsub.f32 %v437_v24, %v1195_v30  ;;  %v429_v46 = vsel %vm418_vm13, %v832_v27, 0.0 }
 0x17e   : > { %v452_v37 = vand.u32 2147483647, %v450_v20  ;;  %v517_v55 = vrot.slane %v1228_v40, 4  ;;  %v512_v58 = vsel %vm509_vm11, %v510_v3, %v511_v32  ;;  %v515_v7 = vsel %vm509_vm11, %v511_v32, 0.0 }
 0x17f   : > { %v377_v42 = vmul.f32 %v375_v22, %v365_v28  ;;  %v453_v56 = vand.u32 2147483647, %v451_v38  ;;  %v529_v22 = vsub.f32 %v515_v7, %v1195_v30  ;;  %vm641_vm9 = vcmp.eq.s32.totalorder %v1158_v60, 9 }
 0x180   : > { %570 = vrot.lane.b32.xlu0 %v1195_v30, %s954_s19  ;;  %414 = vrot.lane.b32.xlu1 %v1195_v30, %s952_s16 }
 0x184   : > { %840 = vrot.lane.b32.xlu0 %v839_v36, %s954_s19  ;;  %490 = vrot.lane.b32.xlu1 %v1192_v29, %s953_s27 }
 0x188   : > { %568 = vrot.lane.b32.xlu1 %v1192_v29, %s954_s19 }
 0x18c   : > { %835 = vrot.lane.b32.xlu1 %v834_v41, %s953_s27 }
 0x1a3   : > { %403 = vadd.xlane.f32.xlu0 %v402_v44 }
 0x1b0   : > { %316 = vadd.xlane.f32.xlu1 %v315_v33  ;;  %v376_v33 = vmul.f32 %v374_v18, %v362_v12  ;;  %v528_v18 = vsub.f32 %v512_v58, %v1192_v29 }
 0x1b4   : > { %481 = vadd.xlane.f32.xlu1 %v480_v47  ;;  %v440_v47 = vsel %vm431_vm10, %v438_v8, %v439_v63  ;;  %v430_v63 = vsel %vm418_vm13, %v833_v45, 0.0 }
 0x1b5   : > { %v454_v59 = vmul.f32 %v452_v37, %v440_v47 }
 0x1b8   : > { %559 = vadd.xlane.f32.xlu1 %v558_v50 }
 0x1ea   : > { %v335_v13 = vpop.permute.xlu1 %334  ;;  %v337_v14 = vpop.permute.xlu0 %336 }
 0x1eb   : > { %v341_v15 = vsel %vm340_vm12, %v335_v13, 0.0  ;;  %v342_v19 = vsel %vm340_vm12, %v337_v14, 0.0  ;;  %v593_v14 = vsub.f32 %v1195_v30, %v1192_v29 }
 0x1ec   : > { %v366_v21 = vsub.f32 %v341_v15, %v1192_v29  ;;  %v367_v23 = vsub.f32 %v342_v19, %v1195_v30  ;;  %v594_v19 = vsub.f32 0.0, %v1195_v30 }
 0x1ed   : > { %v595_v32 = vand.u32 2147483647, %v593_v14 }
 0x1ee   : > { %v368_v31 = vand.u32 2147483647, %v366_v21  ;;  %v369_v2 = vand.u32 2147483647, %v367_v23  ;;  %v413_v0 = vpop.permute.xlu1 %412  ;;  %v493_v1 = vpop.permute.xlu0 %492 }
 0x1ef   : > { %v419_v36 = vsel %vm418_vm13, %v413_v0, 0.0  ;;  %v498_v23 = vsel %vm496_vm15, %v493_v1, 0.0  ;;  %v518_v0 = vsel %vm509_vm11, %v516_v11, %v517_v55  ;;  %v521_v1 = vsel %vm509_vm11, %v517_v55, 0.0 }
 0x1f0   : > { %v370_v41 = vmul.f32 %v368_v31, %v351_v26  ;;  %v371_v43 = vmul.f32 %v369_v2, %v352_v25  ;;  %v444_v44 = vsub.f32 %v419_v36, %v1192_v29  ;;  %v523_v36 = vsub.f32 %v498_v23, %v1195_v30 }
 0x1f1   : > { %v531_v11 = vand.u32 2147483647, %v529_v22 }
 0x1f2   : > { %v378_v49 = vadd.f32 %v376_v33, %v370_v41  ;;  %v379_v50 = vadd.f32 %v377_v42, %v371_v43  ;;  %v446_v51 = vand.u32 2147483647, %v444_v44  ;;  %v415_v52 = vpop.permute.xlu1 %414  ;;  %v571_v53 = vpop.permute.xlu0 %570  ;;  %v596_v33 = vand.u32 2147483647, %v594_v19 }
 0x1f3   : > { %v420_v57 = vsel %vm418_vm13, %v415_v52, 0.0  ;;  %v576_v15 = vsel %vm574_vm14, %v571_v53, 0.0  ;;  %v530_v43 = vand.u32 2147483647, %v528_v18 }
 0x1f4   : > { %v448_v54 = vmul.f32 %v446_v51, %v429_v46  ;;  %v445_v61 = vsub.f32 %v420_v57, %v1195_v30  ;;  %v380_v62 = vmul.f32 %v1130_v5, %v378_v49  ;;  %v381_v4 = vmul.f32 %v1132_v6, %v379_v50 }
 0x1f5   : > { %v455_v6 = vmul.f32 %v453_v56, %v443_v48  ;;  %v588_v28 = vsub.f32 %v576_v15, %v1195_v30  ;;  %v597_v30 = vmul.f32 %v595_v32, %v1214_v35  ;;  %v525_v51 = vand.u32 2147483647, %v523_v36 }
 0x1f6   : > { %v456_v8 = vadd.f32 %v454_v59, %v448_v54  ;;  %v447_v9 = vand.u32 2147483647, %v445_v61  ;;  %v491_v10 = vpop.permute.xlu1 %490  ;;  %v841_v12 = vpop.permute.xlu0 %840  ;;  %v382_v13 = vsel %vm214_vm0, %v380_v62, 0.0  ;;  %v383_v5 = vsel %vm214_vm0, %v381_v4, 0.0 }
 0x1f7   : > { %v384_v21 = vadd.f32 %v383_v5, %v382_v13  ;;  %v497_v24 = vsel %vm496_vm15, %v491_v10, 0.0  ;;  %v843_v25 = vunpack.i.h.bf16 %v841_v12  ;;  %v842_v26 = vunpack.i.l.bf16 %v841_v12 }
 0x1f8   : > { %v449_v20 = vmul.f32 %v447_v9, %v430_v63  ;;  %v458_v2 = vmul.f32 %v456_v8, %v1171_v16  ;;  %v522_v37 = vsub.f32 %v497_v24, %v1192_v29  ;;  %v590_v44 = vand.u32 2147483647, %v588_v28 }
 0x1f9   : > { %385 = vadd.xlane.f32.xlu0 %v384_v21  ;;  %v586_v16 = vsel %vm574_vm14, %v843_v25, 0.0  ;;  %v585_v42 = vsel %vm574_vm14, %v842_v26, 0.0  ;;  %v532_v57 = vmul.f32 %v530_v43, %v518_v0  ;;  %v598_v58 = vmul.f32 0.0, %v596_v33 }
 0x1fa   : > { %v457_v27 = vadd.f32 %v455_v6, %v449_v20  ;;  %v569_v31 = vpop.permute.xlu1 %568  ;;  %v460_v47 = vsel %vm214_vm0, %v458_v2, 0.0  ;;  %v592_v52 = vmul.f32 %v590_v44, %v586_v16  ;;  %v533_v62 = vmul.f32 %v531_v11, %v521_v1 }
 0x1fb   : > { %v575_v3 = vsel %vm574_vm14, %v569_v31, 0.0 }
 0x1fc   : > { %v587_v38 = vsub.f32 %v575_v3, %v1192_v29  ;;  %v459_v41 = vmul.f32 %v457_v27, %v1174_v17  ;;  %v524_v17 = vand.u32 2147483647, %v522_v37  ;;  %v600_v7 = vadd.f32 %v598_v58, %v592_v52 }
 0x1fe   : > { %v589_v45 = vand.u32 2147483647, %v587_v38  ;;  %v836_v46 = vpop.permute.xlu1 %835  ;;  %v461_v48 = vsel %vm214_vm0, %v459_v41, 0.0  ;;  %v602_v14 = vmul.f32 %v600_v7, %v1214_v35 }
 0x1ff   : > { %v838_v49 = vunpack.i.h.bf16 %v836_v46  ;;  %v837_v50 = vunpack.i.l.bf16 %v836_v46  ;;  %v462_v29 = vadd.f32 %v461_v48, %v460_v47 }
 0x200   : > { %v591_v53 = vmul.f32 %v589_v45, %v585_v42  ;;  %v604_v18 = vsel %vm214_vm0, %v602_v14, 0.0 }
 0x201   : > { %v508_v55 = vsel %vm496_vm15, %v838_v49, 0.0  ;;  %v507_v56 = vsel %vm496_vm15, %v837_v50, 0.0  ;;  %463 = vadd.xlane.f32.xlu0 %v462_v29 }
 0x202   : > { %v599_v54 = vadd.f32 %v597_v30, %v591_v53  ;;  %v526_v59 = vmul.f32 %v524_v17, %v507_v56  ;;  %v527_v61 = vmul.f32 %v525_v51, %v508_v55 }
 0x204   : > { %v534_v63 = vadd.f32 %v532_v57, %v526_v59  ;;  %v535_v4 = vadd.f32 %v533_v62, %v527_v61  ;;  %v601_v10 = vmul.f32 %v599_v54, %v1211_v34 }
 0x206   : > { %v536_v8 = vmul.f32 %v534_v63, %v1225_v39  ;;  %v537_v9 = vmul.f32 %v535_v4, %v1228_v40  ;;  %v603_v5 = vsel %vm214_vm0, %v601_v10, 0.0 }
 0x207   : > { %v605_v19 = vadd.f32 %v604_v18, %v603_v5 }
 0x208   : > { %v538_v12 = vsel %vm214_vm0, %v536_v8, 0.0  ;;  %v539_v13 = vsel %vm214_vm0, %v537_v9, 0.0  ;;  %vm615_vm0 = vcmp.eq.s32.totalorder %v1158_v60, 0 }
 0x209   : > { %v540_v15 = vadd.f32 %v539_v13, %v538_v12 }
 0x20b   : > { %541 = vadd.xlane.f32.xlu0 %v540_v15  ;;  %v619_v15 = vstv %s1180_s4 }
 0x20f   : > { %606 = vadd.xlane.f32.xlu0 %v605_v19 }
 0x230   : > { %v404_v23 = vpop.xlane.xlu0 %403 }
 0x231   : > { %v405_v24 = vrot.slane %v404_v23, 4 }
 0x233   : > { %v406_v25 = vadd.f32 %v405_v24, %v404_v23 }
 0x235   : > { %v407_v27 = vrot.slane %v406_v25, 2 }
 0x237   : > { %v408_v0 = vadd.f32 %v407_v27, %v406_v25 }
 0x239   : > { %v409_v33 = vrot.slane %v408_v0, 1 }
 0x23b   : > { %v410_v44 = vadd.f32 %v409_v33, %v408_v0 }
 0x23d   : > { %v317_v6 = vpop.xlane.xlu1 %316 }
 0x23e   : > { %v318_v39 = vrot.slane %v317_v6, 4 }
 0x240   : > { %v319_v20 = vadd.f32 %v318_v39, %v317_v6 }
 0x241   : > { %v482_v35 = vpop.xlane.xlu1 %481 }
 0x242   : > { %v320_v40 = vrot.slane %v319_v20, 2  ;;  %v483_v26 = vrot.slane %v482_v35, 4 }
 0x244   : > { %v321_v21 = vadd.f32 %v320_v40, %v319_v20  ;;  %v484_v2 = vadd.f32 %v483_v26, %v482_v35 }
 0x245   : > { %v560_v36 = vpop.xlane.xlu1 %559 }
 0x246   : > { %v322_v34 = vrot.slane %v321_v21, 1  ;;  %v485_v1 = vrot.slane %v484_v2, 2  ;;  %v561_v42 = vrot.slane %v560_v36, 4 }
 0x248   : > { %v323_v22 = vadd.f32 %v322_v34, %v321_v21  ;;  %v486_v43 = vadd.f32 %v485_v1, %v484_v2  ;;  %v562_v47 = vadd.f32 %v561_v42, %v560_v36 }
 0x24a   : > { %757 = vpush %v323_v22  ;;  %v487_v48 = vrot.slane %v486_v43, 1  ;;  %v563_v50 = vrot.slane %v562_v47, 2 }
 0x24c   : > { %v488_v51 = vadd.f32 %v487_v48, %v486_v43  ;;  %v564_v55 = vadd.f32 %v563_v50, %v562_v47 }
 0x24e   : > { %v565_v61 = vrot.slane %v564_v55, 1 }
 0x250   : > { %v566_v8 = vadd.f32 %v565_v61, %v564_v55 }
 0x27b   : > { %s758_s18 = spop %757 }
 0x27c   : > { %v616_v12 = vstv %s758_s18 }
 0x27d   : > { %v617_v13 = vsel %vm615_vm0, %v616_v12, 0.0 }
 0x27e   : > { %v620_v18 = vsel %vm618_vm1, %v619_v15, %v617_v13 }
 0x286   : > { %v386_v28 = vpop.xlane.xlu0 %385 }
 0x287   : > { %v387_v31 = vrot.slane %v386_v28, 4 }
 0x289   : > { %v388_v3 = vadd.f32 %v387_v31, %v386_v28 }
 0x28b   : > { %v389_v32 = vrot.slane %v388_v3, 2 }
 0x28d   : > { %v390_v38 = vadd.f32 %v389_v32, %v388_v3 }
 0x28e   : > { %v464_v37 = vpop.xlane.xlu0 %463 }
 0x28f   : > { %v465_v41 = vrot.slane %v464_v37, 4  ;;  %v391_v16 = vrot.slane %v390_v38, 1 }
 0x291   : > { %v466_v11 = vadd.f32 %v465_v41, %v464_v37  ;;  %v392_v45 = vadd.f32 %v391_v16, %v390_v38 }
 0x293   : > { %v467_v46 = vrot.slane %v466_v11, 2  ;;  %759 = vpush %v392_v45 }
 0x294   : > { %761 = vpush %v410_v44 }
 0x295   : > { %v468_v30 = vadd.f32 %v467_v46, %v466_v11 }
 0x297   : > { %v469_v49 = vrot.slane %v468_v30, 1 }
 0x298   : > { %v542_v29 = vpop.xlane.xlu0 %541 }
 0x299   : > { %v543_v17 = vrot.slane %v542_v29, 4  ;;  %v470_v52 = vadd.f32 %v469_v49, %v468_v30 }
 0x29b   : > { %v544_v53 = vadd.f32 %v543_v17, %v542_v29  ;;  %763 = vpush %v470_v52 }
 0x29c   : > { %v607_v56 = vpop.xlane.xlu0 %606  ;;  %765 = vpush %v488_v51 }
 0x29d   : > { %v545_v57 = vrot.slane %v544_v53, 2  ;;  %v608_v58 = vrot.slane %v607_v56, 4 }
 0x29f   : > { %v609_v54 = vadd.f32 %v608_v58, %v607_v56  ;;  %v546_v59 = vadd.f32 %v545_v57, %v544_v53 }
 0x2a1   : > { %v610_v62 = vrot.slane %v609_v54, 2  ;;  %v547_v63 = vrot.slane %v546_v59, 1 }
 0x2a3   : > { %v611_v4 = vadd.f32 %v610_v62, %v609_v54  ;;  %v548_v7 = vadd.f32 %v547_v63, %v546_v59 }
 0x2a5   : > { %767 = vpush %v548_v7  ;;  %v612_v9 = vrot.slane %v611_v4, 1 }
 0x2a6   : > { %769 = vpush %v566_v8 }
 0x2a7   : > { %v613_v10 = vadd.f32 %v612_v9, %v611_v4 }
 0x2a9   : > { %771 = vpush %v613_v10 }
 0x2c4   : > { %s760_s16 = spop %759 }
 0x2c5   : > { %s1322_s22 = spop %761  ;;  %v622_v14 = vstv %s760_s16 }
 0x2c6   : > { %v623_v6 = vsel %vm621_vm2, %v622_v14, %v620_v18  ;;  %v636_v34 = vstv %s1322_s22 }
 0x2cc   : > { %s764_s29 = spop %763 }
 0x2cd   : > { %s766_s30 = spop %765  ;;  %v625_v5 = vstv %s764_s29 }
 0x2ce   : > { %v626_v39 = vsel %vm624_vm3, %v625_v5, %v623_v6  ;;  %v639_v23 = vstv %s766_s30 }
 0x2d6   : > { %s768_s24 = spop %767 }
 0x2d7   : > { %v628_v19 = vstv %s768_s24  ;;  %s770_s26 = spop %769 }
 0x2d8   : > { %v629_v20 = vsel %vm627_vm4, %v628_v19, %v626_v39  ;;  %v642_v25 = vstv %s770_s26 }
 0x2da   : > { %s772_s12 = spop %771 }
 0x2db   : > { %v631_v40 = vstv %s772_s12 }
 0x2dc   : > { %v632_v21 = vsel %vm630_vm5, %v631_v40, %v629_v20 }
 0x2dd   : > { %v634_v22 = vsel %vm633_vm6, %v619_v15, %v632_v21 }
 0x2de   : > { %v637_v24 = vsel %vm635_vm7, %v636_v34, %v634_v22 }
 0x2df   : > { %v640_v35 = vsel %vm638_vm8, %v639_v23, %v637_v24 }
 0x2e0   : > { %v643_v26 = vsel %vm641_vm9, %v642_v25, %v640_v35 }
 0x2e1   : > { %644 = vst [vmem:[%s199_s28] sm:$0x1] %v643_v26 }
 0x2e2 PF: > { %p15_p3 = scmp.ge.s32.totalorder %s992_s14, 4   ;;  %s1362_s9 = smov %s936_s10 }
 0x2e3   : > { %s1363_s10 = smov %s940_s11  ;;  %s1364_s11 = smov %s1002_s17 }
 0x2e4   : > { %s1365_s12 = smov %s992_s14  ;;  %17 = sbr.rel (!%p15_p3) target bundleno = 5 (0x5), region = 81 }
 0x2eb   :  { %662 = vsyncpa [#allocation3], 1 }
 0x2ec   :  { %664 = vsyncpa [#allocation3 + $0x1], 1 }
 0x2ed   :  { %665 = vsyncpa [#allocation5], 1 }
 0x2ee   :  { %667 = vsyncpa [#allocation5 + $0x1], 1 }

</bundles_post_ra>
